<compile_context>
chip_gen: v7x
topology: tpu7x:2x2x1
jax: 0.10.0
libtpu: 0.0.40
codegen_flags: <defaults>
</compile_context>

<pallas_src>
import numpy as np
import jax
import jax.numpy as jnp
from jax.experimental import pallas as pl
from jax.experimental.pallas import tpu as pltpu


# ------------------------------------------------------------------------------------ #
# Kernel
# ------------------------------------------------------------------------------------ #
def _graphgru_kernel(x_ref, mask_ref, neg_ref, wbig_ref, w1h_ref, w2h_ref, out_ref):
    """One grid step processes Bt graphs (Bt*N node rows).

    x_ref    : (Bt, N, U+I+1)  [state | inputs | 1]   (the ones column carries biases)
    mask_ref : (N, N)          mask[target, source] in {0, 1}
    neg_ref  : (N, N)          (mask - 1) * 1e30      additive score bias for non-edges
    wbig_ref : (U+I+1, 7U)     packed [q/sqrt(U) | k | v | skip | gru1_x | gru2_x]
    w1h_ref  : (U, 2U)         GRU1 weights acting on the refreshed state
    w2h_ref  : (U, U)          GRU2 weights acting on r * refreshed state
    out_ref  : (Bt, N, U)      new hidden state
    """
    f32 = jnp.float32
    Bt, N, _ = x_ref.shape
    U = out_ref.shape[-1]
    M = Bt * N

    x2 = x_ref[...].reshape(M, -1)                                        # (M, U+I+1)

    # --- every input-side projection in ONE MXU pass (scale & biases pre-folded) ------
    big = jnp.dot(x2, wbig_ref[...], preferred_element_type=f32)          # (M, 7U)

    q = big[:, 0 * U:1 * U].reshape(Bt, N, U)          # already scaled by 1/sqrt(U)
    k = big[:, 1 * U:2 * U].reshape(Bt, N, U)
    v = big[:, 2 * U:3 * U].reshape(Bt, N, U)
    skip = big[:, 3 * U:4 * U]                                            # (M, U)

    # --- TransformerConv (heads=1, concat=False) as masked dense attention ------------
    scores = jnp.einsum("bqd,bkd->bqk", q, k,
                        preferred_element_type=f32) + neg_ref[...][None]  # (Bt, N, N)
    m = jnp.max(scores, axis=-1, keepdims=True)
    p = jnp.exp(scores - m) * mask_ref[...][None]      # keeps empty rows at exactly 0
    denom = jnp.maximum(jnp.sum(p, axis=-1, keepdims=True), f32(1e-30))
    alpha = p / denom                  # exact divide (approx vrcp caused the mismatch)
    agg = jnp.einsum("bqk,bkd->bqd", alpha, v, preferred_element_type=f32)
    gat = agg.reshape(M, U) + skip                     # refreshed state  (M, U)

    # --- GRU gates: r/z in one 2U-wide dot; x-side parts + biases already live in big --
    cd = w1h_ref.dtype
    rz = jax.nn.sigmoid(
        jnp.dot(gat.astype(cd), w1h_ref[...], preferred_element_type=f32)
        + big[:, 4 * U:6 * U])                                            # (M, 2U)
    r = rz[:, :U]
    z = rz[:, U:]

    c = jnp.tanh(
        jnp.dot((r * gat).astype(cd), w2h_ref[...], preferred_element_type=f32)
        + big[:, 6 * U:7 * U])                                            # (M, U)

    # Note: a lane-dense (Bt, N*U) store would avoid 32-lane masked vst's, but requires a
    # (Bt*N, U) -> (Bt, N*U) in-kernel relayout; at ~4 KB per step the write is noise.
    out_ref[...] = ((f32(1.0) - z) * gat + z * c).reshape(Bt, N, U)


# ------------------------------------------------------------------------------------ #
# Tiling heuristics
# ------------------------------------------------------------------------------------ #
def _step_vmem_bytes(bt, N, U, I):
    """Rough per-grid-step VMEM footprint (f32): double-buffered in/out blocks + live
    intermediates (big, gat, rz, c, scores/p/alpha)."""
    rows = bt * N
    io = 2 * 2 * rows * ((U + I + 1) + U)
    interm = rows * (7 * U + 6 * U) + 3 * bt * N * N
    return 4 * (io + interm)


def _pick_batch_tile(B, N, U, I, row_target=256, vmem_budget_bytes=12 * 2**20):
    """Largest divisor Bt of B with Bt*N near `row_target` MXU rows and the per-step
    footprint under budget (budget is conservative so the same tile fits v5e's 16 MiB
    default scoped VMEM and v7x's 64 MiB physical VMEM).  If that collapses the grid to
    one step but a smaller Bt still fills >=128 rows, prefer >=2 steps so the "parallel"
    batch axis can shard across v7x's two TensorCores."""
    divs = [d for d in range(1, B + 1) if B % d == 0]
    fit = [d for d in divs if _step_vmem_bytes(d, N, U, I) <= vmem_budget_bytes] or [1]
    pref = [d for d in fit if d * N <= max(row_target, N)] or [fit[0]]
    bt = max(pref)
    if B // bt < 2:
        alts = [d for d in fit if B // d >= 2 and d * N >= 128]
        if alts:
            bt = max(alts)
    return bt


# ------------------------------------------------------------------------------------ #
# Wrapper
# ------------------------------------------------------------------------------------ #
def graphgru_forward(inputs_flat, state_flat, params, mask, *,
                     num_nodes, num_units, input_dim,
                     batch_tile=None, matmul_dtype=jnp.float32):
    f32 = jnp.float32
    B = inputs_flat.shape[0]
    N, U, I = num_nodes, num_units, input_dim

    inp = inputs_flat.reshape(B, N, I).astype(f32)
    st = state_flat.reshape(B, N, U).astype(f32)
    mask = mask.astype(f32)
    neg = (mask - f32(1.0)) * f32(1e30)          # additive -1e30 bias for non-edges

    # ---- [state | inputs | 1]: single data ref, single in-kernel MXU pass --------------
    ones = jnp.ones((B, N, 1), f32)
    x = jnp.concatenate([st, inp, ones], axis=-1).astype(matmul_dtype)    # (B, N, U+I+1)
    F1 = U + I + 1

    # ---- pack weights (pure trace-time parameter reshuffling) --------------------------
    # attention x = [state, inputs]: rows [:U] act on state, rows [U:] on inputs.
    # GRU weights: rows [:I] act on inputs, rows [I:] on the refreshed state.
    scale = f32(1.0 / np.sqrt(U))                 # folded into q columns / q bias
    g1w, g2w = params["gru1_w"], params["gru2_w"]
    rows_state = jnp.concatenate(
        [params["wq"][:U] * scale, params["wk"][:U], params["wv"][:U],
         params["wskip"][:U], jnp.zeros((U, 3 * U), f32)], axis=1)        # (U, 7U)
    rows_input = jnp.concatenate(
        [params["wq"][U:] * scale, params["wk"][U:], params["wv"][U:],
         params["wskip"][U:], g1w[:I], g2w[:I]], axis=1)                  # (I, 7U)
    row_bias = jnp.concatenate(
        [params["bq"] * scale, params["bk"], params["bv"], params["bskip"],
         params["gru1_b"], params["gru2_b"]], axis=1)                     # (1, 7U)
    wbig = jnp.concatenate([rows_state, rows_input, row_bias],
                           axis=0).astype(matmul_dtype)                   # (U+I+1, 7U)
    w1h = g1w[I:].astype(matmul_dtype)                                    # (U, 2U)
    w2h = g2w[I:].astype(matmul_dtype)                                    # (U, U)

    # ---- batch folding (fill the MXU, amortize ~600-cycle per-step overhead) -----------
    Bt = _pick_batch_tile(B, N, U, I) if batch_tile is None else batch_tile
    grid = (B // Bt,)

    dmap = lambda b: (b, 0, 0)
    cmap = lambda b: (0, 0)
    in_specs = [
        pl.BlockSpec((Bt, N, F1), dmap),      # [state | inputs | 1]
        pl.BlockSpec((N, N), cmap),           # multiplicative adjacency mask
        pl.BlockSpec((N, N), cmap),           # additive -1e30 score bias
        pl.BlockSpec(wbig.shape, cmap),       # packed input-side weights (U+I+1, 7U)
        pl.BlockSpec(w1h.shape, cmap),        # GRU1 hidden weights (U, 2U)
        pl.BlockSpec(w2h.shape, cmap),        # GRU2 hidden weights (U, U)
    ]

    cparams = {"dimension_semantics": ("parallel",)}
    est = _step_vmem_bytes(Bt, N, U, I)
    if 3 * est > 16 * 2**20:                  # beyond v5e's default scoped-VMEM limit
        cparams["vmem_limit_bytes"] = int(min(4 * est, 64 * 2**20))

    # TODO(synk): when the cell is unrolled over T timesteps, add a time grid axis marked
    # "arbitrary", keep the state in a VMEM scratch accumulator, and stream only inputs[t]
    # per step so the (B, N, U) state never round-trips HBM between timesteps.
    out = pl.pallas_call(
        _graphgru_kernel,
        out_shape=jax.ShapeDtypeStruct((B, N, U), f32),
        grid=grid,
        in_specs=in_specs,
        out_specs=pl.BlockSpec((Bt, N, U), dmap),
        compiler_params=pltpu.CompilerParams(**cparams),
    )(x, mask, neg, wbig, w1h, w2h)

    return out.reshape(B, N * U)


# ------------------------------------------------------------------------------------ #
# Pure-JAX reference (mirrors PyTorch GraphGRUCell.forward) and param init
# ------------------------------------------------------------------------------------ #
def _reference_forward(inputs_flat, state_flat, params, mask, *,
                       num_nodes, num_units, input_dim):
    B = inputs_flat.shape[0]
    N, U, I = num_nodes, num_units, input_dim
    inp = inputs_flat.reshape(B, N, I)
    st = state_flat.reshape(B, N, U)
    x = jnp.concatenate([st, inp], axis=-1)                               # (B, N, U+I)

    q = x @ params["wq"] + params["bq"]
    k = x @ params["wk"] + params["bk"]
    v = x @ params["wv"] + params["bv"]
    scores = jnp.einsum("bid,bjd->bij", q, k) / jnp.sqrt(jnp.float32(U))
    scores = jnp.where(mask[None] > 0, scores, -1e30)
    p = jnp.exp(scores - scores.max(-1, keepdims=True)) * mask[None]
    denom = jnp.maximum(p.sum(-1, keepdims=True), 1e-30)
    agg = jnp.einsum("bij,bjd->bid", p / denom, v)
    gat = agg + x @ params["wskip"] + params["bskip"]                     # new state

    cat1 = jnp.concatenate([inp, gat], axis=-1)
    val = jax.nn.sigmoid(cat1 @ params["gru1_w"] + params["gru1_b"])
    r, z = val[..., :U], val[..., U:]
    cat2 = jnp.concatenate([inp, r * gat], axis=-1)
    c = jnp.tanh(cat2 @ params["gru2_w"] + params["gru2_b"])
    return ((1.0 - z) * gat + z * c).reshape(B, N * U)


def _init_params(key, num_units, input_dim):
    U, I = num_units, input_dim
    F = U + I

    def glorot(k, shape):
        lim = np.sqrt(6.0 / (shape[0] + shape[1]))
        return jax.random.uniform(k, shape, jnp.float32, -lim, lim)

    ks = jax.random.split(key, 8)
    return {
        "wq": glorot(ks[0], (F, U)),    "bq": jnp.zeros((1, U), jnp.float32),
        "wk": glorot(ks[1], (F, U)),    "bk": jnp.zeros((1, U), jnp.float32),
        "wv": glorot(ks[2], (F, U)),    "bv": jnp.zeros((1, U), jnp.float32),
        "wskip": glorot(ks[3], (F, U)), "bskip": jnp.zeros((1, U), jnp.float32),
        "gru1_w": glorot(ks[4], (I + U, 2 * U)), "gru1_b": jnp.zeros((1, 2 * U), jnp.float32),
        "gru2_w": glorot(ks[5], (I + U, U)),     "gru2_b": jnp.zeros((1, U), jnp.float32),
    }


if __name__ == "__main__":
    B, N, U, I = 2, 16, 32, 4

    key = jax.random.PRNGKey(0)
    k_in, k_st, k_par = jax.random.split(key, 3)

    inputs = jax.random.normal(k_in, (B, N * I), jnp.float32)
    state = jax.random.normal(k_st, (B, N * U), jnp.float32)
    params = _init_params(k_par, U, I)

    # Synthetic graph: bidirectional ring over the N nodes (r1 = sources, r2 = targets).
    r1 = list(range(N)) + [(i + 1) % N for i in range(N)]
    r2 = [(i + 1) % N for i in range(N)] + list(range(N))
    mask_np = np.zeros((N, N), np.float32)
    for s, t in zip(r1, r2):
        mask_np[t, s] = 1.0          # mask[target, source]
    mask = jnp.asarray(mask_np)

    out = graphgru_forward(inputs, state, params, mask,
                           num_nodes=N, num_units=U, input_dim=I)
    out = jax.block_until_ready(out)

    # Reference run in full f32 matmul precision so the comparison is not polluted by
    # XLA's default bf16 MXU passes.  The kernel uses exact f32 accumulation and an exact
    # softmax divide (the approx vrcp that caused the previous mismatch is gone); the
    # remaining tolerance headroom only covers possible default-precision operand
    # truncation inside the MXU on real hardware (interpret-mode agreement is ~1e-6).
    with jax.default_matmul_precision("float32"):
        ref = _reference_forward(inputs, state, params, mask,
                                 num_nodes=N, num_units=U, input_dim=I)
    np.testing.assert_allclose(np.asarray(out), np.asarray(ref), rtol=1e-2, atol=1e-2)

    print("KERNEL_OK")
</pallas_src>

<mosaic_0001>
module attributes {stable_mosaic.version = 11 : i64} {
  func.func @_graphgru_kernel(%arg0: i32, %arg1: memref<2x16x37xf32, #tpu.memory_space<vmem>>, %arg2: memref<16x16xf32, #tpu.memory_space<vmem>>, %arg3: memref<16x16xf32, #tpu.memory_space<vmem>>, %arg4: memref<37x224xf32, #tpu.memory_space<vmem>>, %arg5: memref<32x64xf32, #tpu.memory_space<vmem>>, %arg6: memref<32x32xf32, #tpu.memory_space<vmem>>, %arg7: memref<2x16x32xf32, #tpu.memory_space<vmem>>) attributes {dimension_semantics = [#tpu.dimension_semantics<parallel>], iteration_bounds = array<i64: 1>, scalar_prefetch = 0 : i64, scratch_operands = 0 : i64, tpu.core_type = #tpu.core_type<tc>, window_params = [{transform_indices = @transform_0, window_bounds = array<i64: 2, 16, 37>}, {pipeline_mode = #tpu.pipeline_mode<synchronous>, transform_indices = @transform_1, window_bounds = array<i64: 16, 16>}, {pipeline_mode = #tpu.pipeline_mode<synchronous>, transform_indices = @transform_2, window_bounds = array<i64: 16, 16>}, {pipeline_mode = #tpu.pipeline_mode<synchronous>, transform_indices = @transform_3, window_bounds = array<i64: 37, 224>}, {pipeline_mode = #tpu.pipeline_mode<synchronous>, transform_indices = @transform_4, window_bounds = array<i64: 32, 64>}, {pipeline_mode = #tpu.pipeline_mode<synchronous>, transform_indices = @transform_5, window_bounds = array<i64: 32, 32>}, {transform_indices = @transform_6, window_bounds = array<i64: 2, 16, 32>}]} {
    %c0 = arith.constant 0 : index
    %c0_0 = arith.constant 0 : index
    %c0_1 = arith.constant 0 : index
    %0 = vector.load %arg1[%c0, %c0_0, %c0_1] : memref<2x16x37xf32, #tpu.memory_space<vmem>>, vector<2x16x37xf32>
    %1 = vector.shape_cast %0 : vector<2x16x37xf32> to vector<32x37xf32>
    %c0_2 = arith.constant 0 : index
    %c0_3 = arith.constant 0 : index
    %2 = vector.load %arg4[%c0_2, %c0_3] : memref<37x224xf32, #tpu.memory_space<vmem>>, vector<37x224xf32>
    %cst = arith.constant dense<0.000000e+00> : vector<32x224xf32>
    %3 = tpu.matmul %1, %2, %cst {dimension_numbers = #tpu.dot_dimension_numbers<[1], [0], [0], [1], [0, 0, 1, 1], [], []>} : vector<32x37xf32>, vector<37x224xf32>, vector<32x224xf32> -> vector<32x224xf32>
    %4 = vector.extract_strided_slice %3 {offsets = [0, 0], sizes = [32, 32], strides = [1, 1]} : vector<32x224xf32> to vector<32x32xf32>
    %5 = vector.shape_cast %4 : vector<32x32xf32> to vector<2x16x32xf32>
    %6 = vector.extract_strided_slice %3 {offsets = [0, 32], sizes = [32, 32], strides = [1, 1]} : vector<32x224xf32> to vector<32x32xf32>
    %7 = vector.shape_cast %6 : vector<32x32xf32> to vector<2x16x32xf32>
    %8 = vector.extract_strided_slice %3 {offsets = [0, 64], sizes = [32, 32], strides = [1, 1]} : vector<32x224xf32> to vector<32x32xf32>
    %9 = vector.shape_cast %8 : vector<32x32xf32> to vector<2x16x32xf32>
    %10 = vector.extract_strided_slice %3 {offsets = [0, 96], sizes = [32, 32], strides = [1, 1]} : vector<32x224xf32> to vector<32x32xf32>
    "tpu.trace_start"() <{level = 10 : i32, message = "bqd,bkd->bqk"}> : () -> ()
    %cst_4 = arith.constant dense<0.000000e+00> : vector<2x16x16xf32>
    %11 = tpu.matmul %5, %7, %cst_4 {dimension_numbers = #tpu.dot_dimension_numbers<[2], [2], [1], [1], [0, 0, 0, 1, 1, 1], [0], [0]>} : vector<2x16x32xf32>, vector<2x16x32xf32>, vector<2x16x16xf32> -> vector<2x16x16xf32>
    "tpu.trace_stop"() : () -> ()
    %c0_5 = arith.constant 0 : index
    %c0_6 = arith.constant 0 : index
    %12 = vector.load %arg3[%c0_5, %c0_6] : memref<16x16xf32, #tpu.memory_space<vmem>>, vector<16x16xf32>
    %13 = vector.shape_cast %12 : vector<16x16xf32> to vector<1x16x16xf32>
    %14 = vector.broadcast %13 : vector<1x16x16xf32> to vector<2x16x16xf32>
    %15 = arith.addf %11, %14 : vector<2x16x16xf32>
    %cst_7 = arith.constant dense<0xFF800000> : vector<2x16xf32>
    %16 = vector.multi_reduction <maximumf>, %15, %cst_7 [2] : vector<2x16x16xf32> to vector<2x16xf32>
    %17 = vector.shape_cast %16 : vector<2x16xf32> to vector<2x16x1xf32>
    %18 = vector.broadcast %17 : vector<2x16x1xf32> to vector<2x16x16xf32>
    %19 = arith.subf %15, %18 : vector<2x16x16xf32>
    %20 = math.exp %19 : vector<2x16x16xf32>
    %c0_8 = arith.constant 0 : index
    %c0_9 = arith.constant 0 : index
    %21 = vector.load %arg2[%c0_8, %c0_9] : memref<16x16xf32, #tpu.memory_space<vmem>>, vector<16x16xf32>
    %22 = vector.shape_cast %21 : vector<16x16xf32> to vector<1x16x16xf32>
    %23 = vector.broadcast %22 : vector<1x16x16xf32> to vector<2x16x16xf32>
    %24 = arith.mulf %20, %23 : vector<2x16x16xf32>
    %cst_10 = arith.constant dense<0.000000e+00> : vector<2x16xf32>
    %25 = vector.multi_reduction <add>, %24, %cst_10 [2] : vector<2x16x16xf32> to vector<2x16xf32>
    %26 = vector.shape_cast %25 : vector<2x16xf32> to vector<2x16x1xf32>
    %cst_11 = arith.constant 1.000000e-30 : f32
    %27 = vector.broadcast %cst_11 : f32 to vector<2x16x1xf32>
    %28 = arith.maximumf %26, %27 : vector<2x16x1xf32>
    %29 = vector.broadcast %28 : vector<2x16x1xf32> to vector<2x16x16xf32>
    %30 = arith.divf %24, %29 : vector<2x16x16xf32>
    "tpu.trace_start"() <{level = 10 : i32, message = "bqk,bkd->bqd"}> : () -> ()
    %cst_12 = arith.constant dense<0.000000e+00> : vector<2x16x32xf32>
    %31 = tpu.matmul %30, %9, %cst_12 {dimension_numbers = #tpu.dot_dimension_numbers<[2], [1], [1], [2], [0, 0, 0, 1, 1, 2], [0], [0]>} : vector<2x16x16xf32>, vector<2x16x32xf32>, vector<2x16x32xf32> -> vector<2x16x32xf32>
    "tpu.trace_stop"() : () -> ()
    %32 = vector.shape_cast %31 : vector<2x16x32xf32> to vector<32x32xf32>
    %33 = arith.addf %32, %10 : vector<32x32xf32>
    %c0_13 = arith.constant 0 : index
    %c0_14 = arith.constant 0 : index
    %34 = vector.load %arg5[%c0_13, %c0_14] : memref<32x64xf32, #tpu.memory_space<vmem>>, vector<32x64xf32>
    %cst_15 = arith.constant dense<0.000000e+00> : vector<32x64xf32>
    %35 = tpu.matmul %33, %34, %cst_15 {dimension_numbers = #tpu.dot_dimension_numbers<[1], [0], [0], [1], [0, 0, 1, 1], [], []>} : vector<32x32xf32>, vector<32x64xf32>, vector<32x64xf32> -> vector<32x64xf32>
    %36 = vector.extract_strided_slice %3 {offsets = [0, 128], sizes = [32, 64], strides = [1, 1]} : vector<32x224xf32> to vector<32x64xf32>
    %37 = arith.addf %35, %36 : vector<32x64xf32>
    %38 = arith.negf %37 : vector<32x64xf32>
    %39 = math.exp %38 : vector<32x64xf32>
    %cst_16 = arith.constant 1.000000e+00 : f32
    %40 = vector.broadcast %cst_16 : f32 to vector<32x64xf32>
    %41 = arith.addf %40, %39 : vector<32x64xf32>
    %42 = arith.divf %40, %41 : vector<32x64xf32>
    %43 = vector.extract_strided_slice %42 {offsets = [0, 0], sizes = [32, 32], strides = [1, 1]} : vector<32x64xf32> to vector<32x32xf32>
    %44 = vector.extract_strided_slice %42 {offsets = [0, 32], sizes = [32, 32], strides = [1, 1]} : vector<32x64xf32> to vector<32x32xf32>
    %45 = arith.mulf %43, %33 : vector<32x32xf32>
    %c0_17 = arith.constant 0 : index
    %c0_18 = arith.constant 0 : index
    %46 = vector.load %arg6[%c0_17, %c0_18] : memref<32x32xf32, #tpu.memory_space<vmem>>, vector<32x32xf32>
    %cst_19 = arith.constant dense<0.000000e+00> : vector<32x32xf32>
    %47 = tpu.matmul %45, %46, %cst_19 {dimension_numbers = #tpu.dot_dimension_numbers<[1], [0], [0], [1], [0, 0, 1, 1], [], []>} : vector<32x32xf32>, vector<32x32xf32>, vector<32x32xf32> -> vector<32x32xf32>
    %48 = vector.extract_strided_slice %3 {offsets = [0, 192], sizes = [32, 32], strides = [1, 1]} : vector<32x224xf32> to vector<32x32xf32>
    %49 = arith.addf %47, %48 : vector<32x32xf32>
    %50 = math.tanh %49 : vector<32x32xf32>
    %cst_20 = arith.constant 1.000000e+00 : f32
    %51 = vector.broadcast %cst_20 : f32 to vector<32x32xf32>
    %52 = arith.subf %51, %44 : vector<32x32xf32>
    %53 = arith.mulf %52, %33 : vector<32x32xf32>
    %54 = arith.mulf %44, %50 : vector<32x32xf32>
    %55 = arith.addf %53, %54 : vector<32x32xf32>
    %56 = vector.shape_cast %55 : vector<32x32xf32> to vector<2x16x32xf32>
    %c0_21 = arith.constant 0 : index
    %c0_22 = arith.constant 0 : index
    %c0_23 = arith.constant 0 : index
    %57 = vector.load %arg7[%c0_21, %c0_22, %c0_23] : memref<2x16x32xf32, #tpu.memory_space<vmem>>, vector<2x16x32xf32>
    tpu.vector_store %arg7[%c0_21, %c0_22, %c0_23], %56 {strides = array<i32>} : memref<2x16x32xf32, #tpu.memory_space<vmem>>, vector<2x16x32xf32>,
    return
  }
  func.func @transform_0(%arg0: i32) -> (i32, i32, i32) {
    %c0_i32 = arith.constant 0 : i32
    %c0_i32_0 = arith.constant 0 : i32
    %c0_i32_1 = arith.constant 0 : i32
    return %arg0, %c0_i32, %c0_i32_0 : i32, i32, i32
  }
  func.func @transform_1(%arg0: i32) -> (i32, i32) {
    %c0_i32 = arith.constant 0 : i32
    %c0_i32_0 = arith.constant 0 : i32
    %c0_i32_1 = arith.constant 0 : i32
    return %c0_i32, %c0_i32_0 : i32, i32
  }
  func.func @transform_2(%arg0: i32) -> (i32, i32) {
    %c0_i32 = arith.constant 0 : i32
    %c0_i32_0 = arith.constant 0 : i32
    %c0_i32_1 = arith.constant 0 : i32
    return %c0_i32, %c0_i32_0 : i32, i32
  }
  func.func @transform_3(%arg0: i32) -> (i32, i32) {
    %c0_i32 = arith.constant 0 : i32
    %c0_i32_0 = arith.constant 0 : i32
    %c0_i32_1 = arith.constant 0 : i32
    return %c0_i32, %c0_i32_0 : i32, i32
  }
  func.func @transform_4(%arg0: i32) -> (i32, i32) {
    %c0_i32 = arith.constant 0 : i32
    %c0_i32_0 = arith.constant 0 : i32
    %c0_i32_1 = arith.constant 0 : i32
    return %c0_i32, %c0_i32_0 : i32, i32
  }
  func.func @transform_5(%arg0: i32) -> (i32, i32) {
    %c0_i32 = arith.constant 0 : i32
    %c0_i32_0 = arith.constant 0 : i32
    %c0_i32_1 = arith.constant 0 : i32
    return %c0_i32, %c0_i32_0 : i32, i32
  }
  func.func @transform_6(%arg0: i32) -> (i32, i32, i32) {
    %c0_i32 = arith.constant 0 : i32
    %c0_i32_0 = arith.constant 0 : i32
    %c0_i32_1 = arith.constant 0 : i32
    return %arg0, %c0_i32, %c0_i32_0 : i32, i32, i32
  }
}

</mosaic_0001>

<bundles_post_ra>
// kernel: tpu_custom_call.1
= control target key start
LH: loop header
LB: loop body
LE: loop exit
PB: predicated region body
PF: predicated region fallthrough
CT: control target
= control target key end

     0   :  { %11 = vsyncpa [#allocation3], 0  ;;  %s1661_s0 = inlined_call_operand.hbm [shape: f32[2,16,37], index: 0, kind: input, shape index: {}]   ;;  %s1662_s1 = inlined_call_operand.hbm [shape: f32[16,16], index: 1, kind: input, shape index: {}]   ;;  %s1663_s2 = inlined_call_operand.hbm [shape: f32[16,16], index: 2, kind: input, shape index: {}]   ;;  %s1664_s3 = inlined_call_operand.hbm [shape: f32[37,224], index: 3, kind: input, shape index: {}]   ;;  %s1665_s4 = inlined_call_operand.hbm [shape: f32[32,64], index: 4, kind: input, shape index: {}]   ;;  %s1666_s5 = inlined_call_operand.hbm [shape: f32[32,32], index: 5, kind: input, shape index: {}]   ;;  %s1667_s6 = inlined_call_operand.hbm [shape: f32[2,16,32], index: 6, kind: output, shape index: {}]  }
   0x1   :  { %12 = vsyncpa [#allocation6], 0 }
   0x2   :  { %13 = vsyncpa [#allocation9], 0 }
   0x3   :  { %14 = vsyncpa [#allocation12], 0 }
   0x4   :  { %15 = vsyncpa [#allocation4], 0  ;;  %s1394_s21 = smov [#allocation5]   ;;  %s1395_s23 = smov [#allocation8]  }
   0x5   :  { %s33_s22 = sshll.u32 %s1394_s21, 4  ;;  %s57_s24 = sshll.u32 %s1395_s23, 4  ;;  %s34_s22 = int_to_ptr.vmem [resolvable:$true] %s33_s22  ;;  %s1444_s24 = int_to_ptr.vmem [resolvable:$true] %s57_s24 }
   0x6   :  { %s1230_s27 = scalar_lea.hbm %s1662_s1, 256 }
   0x7   :  { %p1231_p0 = scmp.ne.s32.totalorder %s1662_s1, %s1230_s27  ;;  %p1234_p1 = scmp.lt.u32.totalorder %s1230_s27, %s1662_s1 }
   0x9   :  { %p1236_p2 = pnand %p1234_p1, %p1231_p0 }
   0xb   :  { %1239 = shalt.err (!%p1236_p2)
}
   0xc   :  { %s1240_s8 = scalar_lea.vmem %s34_s22, 256  ;;  %p1245_p4 = scmp.lt.s32.totalorder %s34_s22, %s34_s22 }
   0xd   :  { %p1241_p3 = scmp.ne.s32.totalorder %s34_s22, %s1240_s8  ;;  %p1246_p5 = scmp.lt.s32.totalorder %s1240_s8, %s1240_s8 }
   0xf   :  { %p1247_p6 = por %p1246_p5, %p1245_p4 }
  0x11   :  { %p1248_p7 = pnand %p1247_p6, %p1241_p3 }
  0x13   :  { %1251 = shalt.err (!%p1248_p7)
}
  0x14   :  { %s1396_s9 = smov 128   ;;  %s1397_s10 = smov 8  }
  0x15   :  { %39 = dma.hbm_to_vmem [thread:$0]  %s1662_s1, 256, %s34_s22, [#allocation6], %s1396_s9, %s1396_s9, %s1397_s10  }
  0x16   :  { %s1252_s15 = scalar_lea.hbm %s1664_s3, 1280 }
  0x17   :  { %p1253_p8 = scmp.ne.s32.totalorder %s1664_s3, %s1252_s15  ;;  %p1256_p9 = scmp.lt.u32.totalorder %s1252_s15, %s1664_s3 }
  0x19   :  { %p1258_p10 = pnand %p1256_p9, %p1253_p8 }
  0x1b   :  { %1261 = shalt.err (!%p1258_p10)
}
  0x1c   :  { %s1262_s20 = scalar_lea.vmem %s1444_s24, 1280  ;;  %p1267_p12 = scmp.lt.s32.totalorder %s1444_s24, %s1444_s24 }
  0x1d   :  { %p1263_p11 = scmp.ne.s32.totalorder %s1444_s24, %s1262_s20  ;;  %p1268_p13 = scmp.lt.s32.totalorder %s1262_s20, %s1262_s20 }
  0x1f   :  { %p1269_p0 = por %p1268_p13, %p1267_p12 }
  0x21   :  { %p1270_p1 = pnand %p1269_p0, %p1263_p11 }
  0x23   :  { %1273 = shalt.err (!%p1270_p1)
}
  0x24   :  { %s1398_s1 = smov 256   ;;  %s1399_s21 = smov 16  }
  0x25   :  { %63 = dma.hbm_to_vmem [thread:$0]  %s1664_s3, 1280, %s1444_s24, [#allocation9], %s1398_s1, %s1398_s1, %s1399_s21  }
  0x26   :  { %s1400_s25 = smov [#allocation2]   ;;  %s1401_s27 = smov [#allocation7]  }
  0x27   :  { %s21_s26 = sshll.u32 %s1400_s25, 4  ;;  %s45_s28 = sshll.u32 %s1401_s27, 4  ;;  %s22_s26 = int_to_ptr.vmem [resolvable:$true] %s21_s26  ;;  %s1478_s28 = int_to_ptr.vmem [resolvable:$true] %s45_s28 }
  0x28   :  { %s1274_s7 = scalar_lea.hbm %s1661_s0, 512 }
  0x29   :  { %p1275_p2 = scmp.ne.s32.totalorder %s1661_s0, %s1274_s7  ;;  %p1278_p3 = scmp.lt.u32.totalorder %s1274_s7, %s1661_s0 }
  0x2b   :  { %p1280_p4 = pnand %p1278_p3, %p1275_p2 }
  0x2d   :  { %1283 = shalt.err (!%p1280_p4)
}
  0x2e   :  { %s1284_s3 = scalar_lea.vmem %s22_s26, 512  ;;  %p1289_p6 = scmp.lt.s32.totalorder %s22_s26, %s22_s26 }
  0x2f   :  { %p1285_p5 = scmp.ne.s32.totalorder %s22_s26, %s1284_s3  ;;  %p1290_p7 = scmp.lt.s32.totalorder %s1284_s3, %s1284_s3 }
  0x31   :  { %p1291_p8 = por %p1290_p7, %p1289_p6 }
  0x33   :  { %p1292_p9 = pnand %p1291_p8, %p1285_p5 }
  0x35   :  { %1295 = shalt.err (!%p1292_p9)
}
  0x36   :  { %27 = dma.hbm_to_vmem [thread:$0]  %s1661_s0, 512, %s22_s26, [#allocation3], %s1396_s9, %s1396_s9, %s1397_s10  }
  0x37   :  { %s1296_s17 = scalar_lea.hbm %s1663_s2, 256 }
  0x38   :  { %p1297_p10 = scmp.ne.s32.totalorder %s1663_s2, %s1296_s17  ;;  %p1300_p11 = scmp.lt.u32.totalorder %s1296_s17, %s1663_s2 }
  0x3a   :  { %p1302_p12 = pnand %p1300_p11, %p1297_p10 }
  0x3c   :  { %1305 = shalt.err (!%p1302_p12)
}
  0x3d   :  { %s1306_s21 = scalar_lea.vmem %s1478_s28, 256  ;;  %p1311_p0 = scmp.lt.s32.totalorder %s1478_s28, %s1478_s28 }
  0x3e   :  { %p1307_p13 = scmp.ne.s32.totalorder %s1478_s28, %s1306_s21  ;;  %p1312_p1 = scmp.lt.s32.totalorder %s1306_s21, %s1306_s21 }
  0x40   :  { %p1313_p2 = por %p1312_p1, %p1311_p0 }
  0x42   :  { %p1314_p3 = pnand %p1313_p2, %p1307_p13 }
  0x44   :  { %1317 = shalt.err (!%p1314_p3)
}
  0x45   :  { %51 = dma.hbm_to_vmem [thread:$0]  %s1663_s2, 256, %s1478_s28, [#allocation6], %s1396_s9, %s1396_s9, %s1397_s10  }
  0x46   :  { %s1402_s23 = smov [#allocation10]   ;;  %s1403_s26 = smov [#allocation11]  }
  0x47   :  { %s69_s25 = sshll.u32 %s1402_s23, 4  ;;  %s81_s27 = sshll.u32 %s1403_s26, 4  ;;  %s70_s25 = int_to_ptr.vmem [resolvable:$true] %s69_s25  ;;  %s1515_s27 = int_to_ptr.vmem [resolvable:$true] %s81_s27 }
  0x48   :  { %s1318_s7 = scalar_lea.hbm %s1665_s4, 512 }
  0x49   :  { %p1319_p4 = scmp.ne.s32.totalorder %s1665_s4, %s1318_s7  ;;  %p1322_p5 = scmp.lt.u32.totalorder %s1318_s7, %s1665_s4 }
  0x4b   :  { %p1324_p6 = pnand %p1322_p5, %p1319_p4 }
  0x4d   :  { %1327 = shalt.err (!%p1324_p6)
}
  0x4e   :  { %s1328_s2 = scalar_lea.vmem %s70_s25, 512  ;;  %p1333_p8 = scmp.lt.s32.totalorder %s70_s25, %s70_s25 }
  0x4f   :  { %p1329_p7 = scmp.ne.s32.totalorder %s70_s25, %s1328_s2  ;;  %p1334_p9 = scmp.lt.s32.totalorder %s1328_s2, %s1328_s2 }
  0x51   :  { %p1335_p10 = por %p1334_p9, %p1333_p8 }
  0x53   :  { %p1336_p11 = pnand %p1335_p10, %p1329_p7 }
  0x55   :  { %1339 = shalt.err (!%p1336_p11)
}
  0x56   :  { %75 = dma.hbm_to_vmem [thread:$0]  %s1665_s4, 512, %s70_s25, [#allocation9], %s1396_s9, %s1396_s9, %s1397_s10  }
  0x57   :  { %s1340_s15 = scalar_lea.hbm %s1666_s5, 512 }
  0x58   :  { %p1341_p12 = scmp.ne.s32.totalorder %s1666_s5, %s1340_s15  ;;  %p1344_p13 = scmp.lt.u32.totalorder %s1340_s15, %s1666_s5 }
  0x5a   :  { %p1346_p0 = pnand %p1344_p13, %p1341_p12 }
  0x5c   :  { %1349 = shalt.err (!%p1346_p0)
}
  0x5d   :  { %s1350_s20 = scalar_lea.vmem %s1515_s27, 512  ;;  %p1355_p2 = scmp.lt.s32.totalorder %s1515_s27, %s1515_s27 }
  0x5e   :  { %p1351_p1 = scmp.ne.s32.totalorder %s1515_s27, %s1350_s20  ;;  %p1356_p3 = scmp.lt.s32.totalorder %s1350_s20, %s1350_s20 }
  0x60   :  { %p1357_p4 = por %p1356_p3, %p1355_p2 }
  0x62   :  { %p1358_p5 = pnand %p1357_p4, %p1351_p1 }
  0x64   :  { %1361 = shalt.err (!%p1358_p5)
}
  0x65   :  { %87 = dma.hbm_to_vmem [thread:$0]  %s1666_s5, 512, %s1515_s27, [#allocation12], %s1396_s9, %s1396_s9, %s1397_s10  }
  0x66   :  { %1384 = dma.done.wait [#allocation3], 512  }
  0x67   :  { %1385 = vsyncadd [#allocation3], 4294966784 }
  0x68   :  { %1386 = dma.done.wait [#allocation6], 512  }
  0x69   :  { %1387 = vsyncadd [#allocation6], 4294966784 }
  0x6a   :  { %1388 = dma.done.wait [#allocation9], 1792  }
  0x6b   :  { %1389 = vsyncadd [#allocation9], 4294965504 }
  0x6c   :  { %1390 = dma.done.wait [#allocation12], 512  }
  0x6d   :  { %1391 = vsyncadd [#allocation12], 4294966784  ;;  %v1404_v0 = vmov 0.0   ;;  %v111_v1 = vld [vmem:[#allocation8 + $0x8] sm:$0xff]  ;;  %v113_v2 = vld [vmem:[#allocation8 + $0x18] sm:$0xff]  ;;  %vm133_vm0 = vcmask 1044480  }
  0x6e   :  { %204 = vmatprep.mubr.f32.mxu0 %v1404_v0  ;;  %v110_v3 = vld [vmem:[#allocation8] sm:$0xff]  ;;  %v1107_v4 = vpack.c.bf16 %v113_v2, %v111_v1  ;;  %v112_v5 = vld [vmem:[#allocation8 + $0x10] sm:$0xff]  ;;  %v115_v6 = vld [vmem:[#allocation8 + $0x28] sm:$0xff]  ;;  %vm120_vm1 = vcmask 302080   ;;  %vm237_vm2 = vcmask 261120   ;;  %s1405_s5 = smov 96  }
  0x6f   :  { %v117_v7 = vld [vmem:[#allocation8 + $0x38] sm:$0xff]  ;;  %v1109_v8 = vpack.c.bf16 %v112_v5, %v110_v3  ;;  %v114_v10 = vld [vmem:[#allocation8 + $0x20] sm:$0xff]  ;;  %v116_v11 = vld [vmem:[#allocation8 + $0x30] sm:$0xff]  ;;  %vm410_vm4 = vcmask 130048   ;;  %s1406_s21 = smov 64   ;;  %s1407_s0 = smov 32  }
  0x70   :  { %v1111_v9 = vpack.c.bf16 %v117_v7, %v115_v6  ;;  %1108 = vmatprep.subr.bf16.mxu0 %v1107_v4  ;;  %v1113_v12 = vpack.c.bf16 %v116_v11, %v114_v10  ;;  %v119_v13 = vld [vmem:[#allocation8 + $0x48] sm:$0x1f]  ;;  %v118_v14 = vld [vmem:[#allocation8 + $0x40] sm:$0x1f]  ;;  %v108_v17 = vld [vmem:[#allocation2 + $0x10] sm:$0xff]  ;;  %s1408_s22 = smov [#allocation13]  }
  0x71   :  { %1110 = vmatpush1.bf16.msra.mxu0 %v1109_v8  ;;  %v106_v15 = vld [vmem:[#allocation2] sm:$0xff]  ;;  %v107_v16 = vld [vmem:[#allocation2 + $0x8] sm:$0xff]  ;;  %v109_v18 = vld [vmem:[#allocation2 + $0x18] sm:$0xff]  ;;  %s974_s23 = sshll.u32 %s1408_s22, 4  ;;  %s975_s23 = int_to_ptr.vmem [resolvable:$true] %s974_s23 }
  0x72   :  { %1112 = vmatprep.subr.bf16.mxu0 %v1111_v9  ;;  %vm1116_vm3 = vmpackc.low %vm237_vm2, %vm237_vm2  ;;  %v229_v37 = vld [vmem:[#allocation7] sm:$0xff]  ;;  %v230_v39 = vld [vmem:[#allocation7 + $0x8] sm:$0xff]  ;;  %s1362_s25 = scalar_lea.vmem %s975_s23, 512  ;;  %p1367_p7 = scmp.lt.s32.totalorder %s975_s23, %s975_s23 }
  0x73   :  { %v436_v63 = vld [vmem:[#allocation5 + $0x8] sm:$0xff]  ;;  %v435_v2 = vld [vmem:[#allocation5] sm:$0xff]  ;;  %p1363_p6 = scmp.ne.s32.totalorder %s975_s23, %s1362_s25  ;;  %p1368_p8 = scmp.lt.s32.totalorder %s1362_s25, %s1362_s25 }
  0x75   :  { %1114 = vmatpush1.bf16.msra.mxu0 %v1113_v12  ;;  %p1369_p9 = por %p1368_p8, %p1367_p7 }
  0x76   :  { %989 = vmatprep.subr.msk.mxu0 %vm133_vm0, %v119_v13  ;;  %v655_v13 = vld [vmem:[#allocation10] sm:$0xff] }
  0x77   :  { %p1370_p10 = pnand %p1369_p9, %p1363_p6 }
  0x79   :  { %990 = vmatpush1.msk.msra.mxu0 %vm133_vm0, %v118_v14  ;;  %v656_v14 = vld [vmem:[#allocation10 + $0x8] sm:$0xff] }
  0x7a   :  { %991 = vmatmul.mubr.msk.f32.vlgmr.msra.gmra.mrb[0].mxu0 %vm120_vm1, %v106_v15  ;;  %v657_v15 = vld [vmem:[#allocation10 + $0x10] sm:$0xff] }
  0x7b   :  { %210 = vmatprep.mubr.f32.mxu0 %v1404_v0 }
  0x7e   :  { %992 = vmatmul.mubr.msk.f32.gmra.mrb[2].mxu0 %vm120_vm1, %v107_v16  ;;  %v1135_v16 = vpack.c.bf16 %v656_v14, %v655_v13 }
  0x7f   :  { %216 = vmatprep.mubr.f32.mxu0 %v1404_v0 }
  0x80   :  { %1136 = vmatprep.subr.bf16.mxu0 %v1135_v16 }
  0x81   :  { %1138 = vmatpush3.bf16.msra.mxu0 %v1135_v16 }
  0x82   :  { %993 = vmatmul.mubr.msk.f32.gmra.mrb[4].mxu0 %vm120_vm1, %v108_v17  ;;  %v658_v17 = vld [vmem:[#allocation10 + $0x18] sm:$0xff] }
  0x83   :  { %222 = vmatprep.mubr.f32.mxu0 %v1404_v0 }
  0x86   :  { %994 = vmatmul.mubr.msk.f32.gmra.mrb[6].mxu0 %vm120_vm1, %v109_v18  ;;  %v1139_v18 = vpack.c.bf16 %v658_v17, %v657_v15 }
  0x88   :  { %1140 = vmatprep.subr.bf16.mxu0 %v1139_v18 }
  0x89   :  { %1142 = vmatpush3.bf16.msra.mxu0 %v1139_v18 }
 0x14d   :  { %v1552_v19 = vpop.f32.mrb[0].mxu0 }
 0x14e   :  { %v1554_v20 = vpop.f32.mrb[1].mxu0  ;;  %1055 = vmatprep.mubr.msk.f32.mxu1 %vm237_vm2, %v1552_v19 }
 0x151   :  { %v1558_v21 = vpop.f32.mrb[2].mxu0 }
 0x152   :  { %v1560_v22 = vpop.f32.mrb[3].mxu0  ;;  %v1564_v23 = vpack.i.bf16 %v1558_v21, %v1552_v19 }
 0x154   :  { %1171 = vrot.lane.b32.xlu0 %v1564_v23, %s1405_s5 }
 0x155   :  { %v1568_v24 = vpop.f32.mrb[4].mxu0 }
 0x156   :  { %v1570_v25 = vpop.f32.mrb[5].mxu0 }
 0x159   :  { %v1572_v26 = vpop.f32.mrb[6].mxu0 }
 0x15a   :  { %v1175_v27 = vpack.i.bf16 %v1572_v26, %v1568_v24  ;;  %v1576_v28 = vpop.f32.mrb[7].mxu0 }
 0x15c   :  { %1176 = vrot.lane.b32.xlu0 %v1175_v27, %s1405_s5 }
 0x1c6   :  { %v1172_v29 = vpop.permute.xlu0 %1171 }
 0x1c7   :  { %v1174_v30 = vunpack.i.h.bf16 %v1172_v29  ;;  %v1173_v31 = vunpack.i.l.bf16 %v1172_v29 }
 0x1c9   :  { %v1115_v32 = vpack.c.bf16 %v1174_v30, %v1173_v31 }
 0x1cb   :  { %1117 = vmatprep.subr.msk.bf16.mxu1 %vm1116_vm3, %v1115_v32 }
 0x1cc   :  { %1120 = vmatpush3.bf16.xpose.msk.msra.mxu1 %vm1116_vm3, %v1115_v32 }
 0x1ce   :  { %v1177_v33 = vpop.permute.xlu0 %1176 }
 0x1cf   :  { %v1179_v34 = vunpack.i.h.bf16 %v1177_v33  ;;  %v1178_v35 = vunpack.i.l.bf16 %v1177_v33 }
 0x1d1   :  { %v1121_v36 = vpack.c.bf16 %v1179_v34, %v1178_v35 }
 0x1d3   :  { %1056 = vmatmul.mubr.msk.f32.vlgmr.msra.gmra.mrb[0].mxu1 %vm237_vm2, %v1558_v21  ;;  %1123 = vmatprep.subr.msk.bf16.mxu1 %vm1116_vm3, %v1121_v36 }
 0x1d4   :  { %1126 = vmatpush3.bf16.xpose.msk.msra.mxu1 %vm1116_vm3, %v1121_v36  ;;  %1062 = vmatprep.mubr.msk.f32.mxu1 %vm237_vm2, %v1568_v24 }
 0x1db   :  { %1063 = vmatmul.mubr.msk.f32.vlgmr.msra.gmra.mrb[2].mxu1 %vm237_vm2, %v1572_v26 }
 0x2a6   :  { %v1057_v38 = vpop.f32.mrb[0].mxu1 }
 0x2a7   :  { %v312_v40 = vpop.f32.mrb[1].mxu1  ;;  %v318_v42 = vadd.f32 %v1057_v38, %v230_v39 }
 0x2a8   :  { %v313_v41 = vadd.f32 %v312_v40, %v229_v37 }
 0x2a9   :  { %v414_v45 = vsel %vm410_vm4, %v318_v42, -inf }
 0x2aa   :  { %v411_v43 = vsel %vm410_vm4, %v313_v41, -inf }
 0x2ab   :  { %412 = vmax.xlane.f32.xlu1 %v411_v43 }
 0x2ae   :  { %v1064_v44 = vpop.f32.mrb[2].mxu1 }
 0x2af   :  { %v407_v46 = vadd.f32 %v1064_v44, %v230_v39  ;;  %415 = vmax.xlane.f32.xlu1 %v414_v45  ;;  %v401_v47 = vpop.f32.mrb[3].mxu1 }
 0x2b0   :  { %v402_v48 = vadd.f32 %v401_v47, %v229_v37 }
 0x2b1   :  { %v420_v49 = vsel %vm410_vm4, %v407_v46, -inf }
 0x2b2   :  { %v417_v50 = vsel %vm410_vm4, %v402_v48, -inf }
 0x2b3   :  { %421 = vmax.xlane.f32.xlu1 %v420_v49  ;;  %418 = vmax.xlane.f32.xlu0 %v417_v50 }
 0x2c9   :  { %1186 = vrot.lane.b32.xlu0 %v1175_v27, %s1406_s21 }
 0x2cd   :  { %792 = vrot.lane.b32.xlu0 %v1554_v20, %s1406_s21 }
 0x2d1   :  { %796 = vrot.lane.b32.xlu0 %v1570_v25, %s1406_s21 }
 0x338   :  { %v413_v51 = vpop.xlane.xlu1 %412 }
 0x339   :  { %v423_v52 = vsub.f32 %v313_v41, %v413_v51 }
 0x33b   :  { %v427_v53 = vmul.f32 1.442695, %v423_v52 }
 0x33c   :  { %v416_v54 = vpop.xlane.xlu1 %415 }
 0x33d   :  { %v424_v55 = vsub.f32 %v318_v42, %v416_v54  ;;  %1190 = vpow2.f32 %v427_v53 }
 0x33f   :  { %v429_v56 = vmul.f32 1.442695, %v424_v55 }
 0x340   :  { %v422_v57 = vpop.xlane.xlu1 %421  ;;  %v419_v58 = vpop.xlane.xlu0 %418 }
 0x341   :  { %1192 = vpow2.f32 %v429_v56  ;;  %v426_v59 = vsub.f32 %v407_v46, %v422_v57  ;;  %v425_v60 = vsub.f32 %v402_v48, %v419_v58 }
 0x343   :  { %v433_v61 = vmul.f32 1.442695, %v426_v59  ;;  %v431_v62 = vmul.f32 1.442695, %v425_v60  ;;  %v784_v59 = vld [vmem:[#allocation11] sm:$0xff]  ;;  %v785_v60 = vld [vmem:[#allocation11 + $0x8] sm:$0xff] }
 0x344   :  { %v1187_v31 = vpop.permute.xlu0 %1186 }
 0x345   :  { %1194 = vpow2.f32 %v433_v61  ;;  %v1189_v34 = vunpack.i.h.bf16 %v1187_v31  ;;  %v1188_v35 = vunpack.i.l.bf16 %v1187_v31  ;;  %v786_v61 = vld [vmem:[#allocation11 + $0x10] sm:$0xff] }
 0x346   :  { %1196 = vpow2.f32 %v431_v62  ;;  %v1143_v62 = vpack.c.bf16 %v785_v60, %v784_v59 }
 0x347   :  { %v1191_v0 = vpop.eup %1190  ;;  %v1131_v41 = vpack.c.bf16 %v1189_v34, %v1188_v35 }
 0x348   :  { %v437_v5 = vmul.f32 %v1191_v0, %v435_v2  ;;  %1144 = vmatprep.subr.bf16.mxu0 %v1143_v62 }
 0x34a   :  { %v441_v7 = vsel %vm410_vm4, %v437_v5, 0.0 }
 0x34b   :  { %v1193_v1 = vpop.eup %1192 }
 0x34c   :  { %v438_v3 = vmul.f32 %v1193_v1, %v436_v63 }
 0x34e   :  { %v444_v4 = vsel %vm410_vm4, %v438_v3, 0.0 }
 0x34f   :  { %v1195_v6 = vpop.eup %1194  ;;  %445 = vadd.xlane.f32.xlu1 %v444_v4 }
 0x350   :  { %v440_v8 = vmul.f32 %v1195_v6, %v436_v63  ;;  %v1197_v9 = vpop.eup %1196  ;;  %v787_v63 = vld [vmem:[#allocation11 + $0x18] sm:$0xff] }
 0x351   :  { %v439_v11 = vmul.f32 %v1197_v9, %v435_v2  ;;  %v1147_v0 = vpack.c.bf16 %v787_v63, %v786_v61 }
 0x352   :  { %v450_v10 = vsel %vm410_vm4, %v440_v8, 0.0 }
 0x353   :  { %442 = vadd.xlane.f32.xlu1 %v441_v7  ;;  %v447_v12 = vsel %vm410_vm4, %v439_v11, 0.0 }
 0x357   :  { %451 = vadd.xlane.f32.xlu1 %v450_v10 }
 0x35b   :  { %448 = vadd.xlane.f32.xlu1 %v447_v12 }
 0x36c   :  { %1181 = vrot.lane.b32.xlu1 %v1564_v23, %s1406_s21 }
 0x370   :  { %639 = vrot.lane.b32.xlu1 %v1552_v19, %s1407_s0 }
 0x374   :  { %641 = vrot.lane.b32.xlu1 %v1558_v21, %s1407_s0 }
 0x378   :  { %643 = vrot.lane.b32.xlu1 %v1568_v24, %s1407_s0 }
 0x37c   :  { %645 = vrot.lane.b32.xlu1 %v1572_v26, %s1407_s0 }
 0x380   :  { %794 = vrot.lane.b32.xlu1 %v1560_v22, %s1406_s21 }
 0x384   :  { %798 = vrot.lane.b32.xlu1 %v1576_v28, %s1406_s21 }
 0x3dc   :  { %v446_v19 = vpop.xlane.xlu1 %445 }
 0x3dd   :  { %v454_v24 = vmax.f32 %v446_v19, 1e-30 }
 0x3e0   :  { %v443_v21 = vpop.xlane.xlu1 %442 }
 0x3e1   :  { %v453_v23 = vmax.f32 %v443_v21, 1e-30 }
 0x3e3   :  { %1198 = vrcp.f32 %v453_v23 }
 0x3e4   :  { %v452_v26 = vpop.xlane.xlu1 %451  ;;  %1200 = vrcp.f32 %v454_v24 }
 0x3e5   :  { %v456_v27 = vmax.f32 %v452_v26, 1e-30 }
 0x3e7   :  { %1202 = vrcp.f32 %v456_v27 }
 0x3e8   :  { %v449_v29 = vpop.xlane.xlu1 %448 }
 0x3e9   :  { %v455_v30 = vmax.f32 %v449_v29, 1e-30 }
 0x3eb   :  { %1204 = vrcp.f32 %v455_v30  ;;  %v793_v30 = vpop.permute.xlu0 %792 }
 0x3ec   :  { %v1182_v32 = vpop.permute.xlu1 %1181 }
 0x3ed   :  { %v1199_v33 = vpop.eup %1198  ;;  %v1184_v36 = vunpack.i.h.bf16 %v1182_v32  ;;  %v1183_v37 = vunpack.i.l.bf16 %v1182_v32 }
 0x3ee   :  { %v458_v38 = vmul.f32 %v1199_v33, %v437_v5  ;;  %v1201_v40 = vpop.eup %1200 }
 0x3ef   :  { %v1127_v39 = vpack.c.bf16 %v1184_v36, %v1183_v37  ;;  %v460_v42 = vmul.f32 %v1201_v40, %v438_v3  ;;  %v797_v37 = vpop.permute.xlu0 %796 }
 0x3f0   :  { %1069 = vmatprep.mubr.msk.f32.mxu1 %vm410_vm4, %v458_v38  ;;  %v640_v47 = vpop.permute.xlu1 %639 }
 0x3f1   :  { %1128 = vmatprep.subr.bf16.mxu1 %v1127_v39  ;;  %v1203_v43 = vpop.eup %1202 }
 0x3f2   :  { %1130 = vmatpush3.bf16.msra.mxu1 %v1127_v39  ;;  %v464_v46 = vmul.f32 %v1203_v43, %v440_v8 }
 0x3f3   :  { %1132 = vmatprep.subr.bf16.mxu1 %v1131_v41 }
 0x3f4   :  { %v642_v48 = vpop.permute.xlu1 %641 }
 0x3f5   :  { %v1205_v44 = vpop.eup %1204  ;;  %1070 = vmatmul.mubr.msk.f32.vlgmr.msra.gmra.mrb[4].mxu1 %vm410_vm4, %v460_v42 }
 0x3f6   :  { %1134 = vmatpush3.bf16.msra.mxu1 %v1131_v41  ;;  %v462_v45 = vmul.f32 %v1205_v44, %v439_v11 }
 0x3f7   :  { %1151 = vmatprep.subr.bf16.mxu1 %v1143_v62 }
 0x3f8   :  { %1076 = vmatprep.mubr.msk.f32.mxu1 %vm410_vm4, %v462_v45  ;;  %v644_v49 = vpop.permute.xlu1 %643 }
 0x3f9   :  { %1077 = vmatmul.mubr.msk.f32.vlgmr.msra.gmra.mrb[6].mxu1 %vm410_vm4, %v464_v46 }
 0x3fa   :  { %1153 = vmatpush3.bf16.msra.mxu1 %v1143_v62 }
 0x3fb   :  { %1152 = vmatprep.subr.bf16.mxu1 %v1147_v0 }
 0x3fc   :  { %v646_v54 = vpop.permute.xlu1 %645 }
 0x3fe   :  { %1154 = vmatpush3.bf16.msra.mxu1 %v1147_v0 }
 0x400   :  { %v795_v29 = vpop.permute.xlu1 %794 }
 0x404   :  { %v799_v35 = vpop.permute.xlu1 %798 }
 0x4c8   :  { %v1071_v50 = vpop.f32.mrb[4].mxu1 }
 0x4c9   :  { %v652_v51 = vadd.f32 %v1071_v50, %v642_v48  ;;  %v543_v52 = vpop.f32.mrb[5].mxu1 }
 0x4ca   :  { %v651_v53 = vadd.f32 %v640_v47, %v543_v52 }
 0x4cb   :  { %911 = vrot.lane.b32.xlu1 %v652_v51, %s1407_s0 }
 0x4cc   :  { %909 = vrot.lane.b32.xlu0 %v651_v53, %s1407_s0  ;;  %v1078_v55 = vpop.f32.mrb[6].mxu1  ;;  %1087 = vmatprep.mubr.msk.f32.mxu0 %vm237_vm2, %v651_v53 }
 0x4cd   :  { %v654_v56 = vadd.f32 %v1078_v55, %v646_v54  ;;  %v630_v57 = vpop.f32.mrb[7].mxu1  ;;  %1088 = vmatmul.mubr.msk.f32.vlgmr.msra.gmra.mrb[8].mxu0 %vm237_vm2, %v652_v51 }
 0x4ce   :  { %v653_v58 = vadd.f32 %v644_v49, %v630_v57  ;;  %1146 = vmatpush3.bf16.msra.mxu0 %v1143_v62 }
 0x4cf   :  { %915 = vrot.lane.b32.xlu1 %v654_v56, %s1407_s0  ;;  %1148 = vmatprep.subr.bf16.mxu0 %v1147_v0 }
 0x4d0   :  { %913 = vrot.lane.b32.xlu0 %v653_v58, %s1407_s0  ;;  %1090 = vmatprep.mubr.msk.f32.mxu0 %vm237_vm2, %v653_v58 }
 0x4d1   :  { %1091 = vmatmul.mubr.msk.f32.gmra.mrb[10].mxu0 %vm237_vm2, %v654_v56 }
 0x4d2   :  { %1150 = vmatpush3.bf16.msra.mxu0 %v1147_v0 }
 0x53d   :  { %v912_v45 = vpop.permute.xlu1 %911 }
 0x53e   :  { %v910_v46 = vpop.permute.xlu0 %909 }
 0x541   :  { %v916_v47 = vpop.permute.xlu1 %915 }
 0x542   :  { %v914_v48 = vpop.permute.xlu0 %913 }
 0x5a0   :  { %v1089_v1 = vpop.f32.mrb[8].mxu0 }
 0x5a1   :  { %v743_v2 = vadd.f32 %v1089_v1, %v1560_v22  ;;  %v737_v3 = vpop.f32.mrb[9].mxu0 }
 0x5a2   :  { %v738_v4 = vadd.f32 %v737_v3, %v1554_v20 }
 0x5a3   :  { %v1012_v5 = vmul.f32 -1.442695, %v743_v2 }
 0x5a4   :  { %v1011_v6 = vmul.f32 -1.442695, %v738_v4  ;;  %v1092_v7 = vpop.f32.mrb[10].mxu0 }
 0x5a5   :  { %1206 = vpow2.f32 %v1012_v5  ;;  %v753_v8 = vadd.f32 %v1092_v7, %v1576_v28  ;;  %v747_v9 = vpop.f32.mrb[11].mxu0 }
 0x5a6   :  { %1208 = vpow2.f32 %v1011_v6  ;;  %v748_v10 = vadd.f32 %v747_v9, %v1570_v25 }
 0x5a7   :  { %v1014_v11 = vmul.f32 -1.442695, %v753_v8 }
 0x5a8   :  { %v1013_v12 = vmul.f32 -1.442695, %v748_v10 }
 0x5a9   :  { %1210 = vpow2.f32 %v1014_v11 }
 0x5aa   :  { %1212 = vpow2.f32 %v1013_v12 }
 0x5af   :  { %v1207_v13 = vpop.eup %1206 }
 0x5b0   :  { %v1209_v14 = vpop.eup %1208  ;;  %v769_v22 = vadd.f32 1.0, %v1207_v13 }
 0x5b1   :  { %v768_v15 = vadd.f32 1.0, %v1209_v14 }
 0x5b2   :  { %1214 = vrcp.f32 %v769_v22 }
 0x5b3   :  { %v1211_v20 = vpop.eup %1210  ;;  %1216 = vrcp.f32 %v768_v15 }
 0x5b4   :  { %v1213_v16 = vpop.eup %1212  ;;  %v771_v17 = vadd.f32 1.0, %v1211_v20 }
 0x5b5   :  { %v770_v18 = vadd.f32 1.0, %v1213_v16 }
 0x5b6   :  { %1218 = vrcp.f32 %v771_v17 }
 0x5b7   :  { %1220 = vrcp.f32 %v770_v18 }
 0x5bc   :  { %v1215_v28 = vpop.eup %1214 }
 0x5bd   :  { %v1217_v19 = vpop.eup %1216  ;;  %v781_v25 = vmul.f32 %v1215_v28, %v652_v51  ;;  %v906_v49 = vsub.f32 1.0, %v1215_v28 }
 0x5be   :  { %v780_v21 = vmul.f32 %v1217_v19, %v651_v53  ;;  %v905_v50 = vsub.f32 1.0, %v1217_v19 }
 0x5bf   :  { %v922_v52 = vmul.f32 %v912_v45, %v906_v49 }
 0x5c0   :  { %v1219_v23 = vpop.eup %1218  ;;  %1101 = vmatprep.mubr.msk.f32.mxu0 %vm237_vm2, %v780_v21 }
 0x5c1   :  { %v1221_v24 = vpop.eup %1220  ;;  %1102 = vmatmul.mubr.msk.f32.vlgmr.msra.gmra.mrb[12].mxu0 %vm237_vm2, %v781_v25  ;;  %v783_v27 = vmul.f32 %v1219_v23, %v654_v56  ;;  %v908_v55 = vsub.f32 1.0, %v1219_v23  ;;  %v921_v56 = vmul.f32 %v910_v46, %v905_v50 }
 0x5c2   :  { %v782_v26 = vmul.f32 %v1221_v24, %v653_v58  ;;  %v907_v58 = vsub.f32 1.0, %v1221_v24 }
 0x5c3   :  { %v924_v62 = vmul.f32 %v916_v47, %v908_v55 }
 0x5c4   :  { %1104 = vmatprep.mubr.msk.f32.mxu1 %vm237_vm2, %v782_v26  ;;  %v923_v1 = vmul.f32 %v914_v48, %v907_v58 }
 0x5c5   :  { %1105 = vmatmul.mubr.msk.f32.vlgmr.msra.gmra.mrb[8].mxu1 %vm237_vm2, %v783_v27 }
 0x694   :  { %v1103_v31 = vpop.f32.mrb[12].mxu0 }
 0x695   :  { %v888_v32 = vadd.f32 %v1103_v31, %v795_v29  ;;  %v882_v33 = vpop.f32.mrb[13].mxu0 }
 0x696   :  { %v883_v34 = vadd.f32 %v882_v33, %v793_v30 }
 0x697   :  { %1222 = vtanh.f32 %v888_v32 }
 0x698   :  { %1224 = vtanh.f32 %v883_v34  ;;  %v1106_v36 = vpop.f32.mrb[8].mxu1 }
 0x699   :  { %v898_v38 = vadd.f32 %v1106_v36, %v799_v35  ;;  %v892_v39 = vpop.f32.mrb[9].mxu1 }
 0x69a   :  { %v893_v40 = vadd.f32 %v892_v39, %v797_v37 }
 0x69b   :  { %1226 = vtanh.f32 %v898_v38 }
 0x69c   :  { %1228 = vtanh.f32 %v893_v40 }
 0x6a1   :  { %v1223_v41 = vpop.eup %1222 }
 0x6a2   :  { %v1225_v42 = vpop.eup %1224  ;;  %931 = vrot.lane.b32.xlu1 %v1223_v41, %s1407_s0 }
 0x6a3   :  { %929 = vrot.lane.b32.xlu0 %v1225_v42, %s1407_s0 }
 0x6a5   :  { %v1227_v43 = vpop.eup %1226 }
 0x6a6   :  { %v1229_v44 = vpop.eup %1228  ;;  %935 = vrot.lane.b32.xlu1 %v1227_v43, %s1407_s0 }
 0x6a7   :  { %933 = vrot.lane.b32.xlu0 %v1229_v44, %s1407_s0 }
 0x714   :  { %v932_v51 = vpop.permute.xlu1 %931 }
 0x715   :  { %v942_v53 = vmul.f32 %v1215_v28, %v932_v51  ;;  %v930_v54 = vpop.permute.xlu0 %929 }
 0x716   :  { %v941_v57 = vmul.f32 %v1217_v19, %v930_v54 }
 0x717   :  { %v946_v59 = vadd.f32 %v942_v53, %v922_v52 }
 0x718   :  { %v945_v60 = vadd.f32 %v941_v57, %v921_v56  ;;  %v936_v61 = vpop.permute.xlu1 %935 }
 0x719   :  { %v944_v63 = vmul.f32 %v1219_v23, %v936_v61  ;;  %955 = vrot.lane.b32.xlu1 %v946_v59, %s1405_s5  ;;  %v934_v0 = vpop.permute.xlu0 %933 }
 0x71a   :  { %v943_v2 = vmul.f32 %v1221_v24, %v934_v0  ;;  %953 = vrot.lane.b32.xlu0 %v945_v60, %s1405_s5 }
 0x71b   :  { %v948_v3 = vadd.f32 %v944_v63, %v924_v62 }
 0x71c   :  { %v947_v4 = vadd.f32 %v943_v2, %v923_v1 }
 0x71d   :  { %959 = vrot.lane.b32.xlu1 %v948_v3, %s1405_s5 }
 0x71e   :  { %957 = vrot.lane.b32.xlu0 %v947_v4, %s1405_s5 }
 0x78b   :  { %v956_v5 = vpop.permute.xlu1 %955 }
 0x78c   :  { %966 = vst.msk [vmem:[#allocation13 + $0x8] sm:$0xff] %vm237_vm2, %v956_v5  ;;  %v954_v6 = vpop.permute.xlu0 %953 }
 0x78d   :  { %965 = vst.msk [vmem:[#allocation13] sm:$0xff] %vm237_vm2, %v954_v6 }
 0x78f   :  { %v960_v7 = vpop.permute.xlu1 %959 }
 0x790   :  { %968 = vst.msk [vmem:[#allocation13 + $0x18] sm:$0xff] %vm237_vm2, %v960_v7  ;;  %v958_v8 = vpop.permute.xlu0 %957 }
 0x791   :  { %967 = vst.msk [vmem:[#allocation13 + $0x10] sm:$0xff] %vm237_vm2, %v958_v8 }
 0x792   :  { %1373 = shalt.err (!%p1370_p10)
}
 0x793   :  { %s1374_s29 = scalar_lea.hbm %s1667_s6, 512 }
 0x794   :  { %p1375_p11 = scmp.ne.s32.totalorder %s1667_s6, %s1374_s29  ;;  %p1378_p12 = scmp.lt.u32.totalorder %s1374_s29, %s1667_s6 }
 0x796   :  { %p1380_p13 = pnand %p1378_p12, %p1375_p11 }
 0x798   :  { %1383 = shalt.err (!%p1380_p13)
}
 0x799   :  { %980 = dma.vmem_to_hbm [thread:$0]  %s975_s23, 512, %s1667_s6, [#allocation4], %s1396_s9, %s1396_s9, %s1397_s10  }
 0x79a   :  { %1392 = dma.done.wait [#allocation4], 512  }
 0x79b   :  { %1393 = vsyncadd [#allocation4], 4294966784 }
 0x79c   :  { %984 = vsyncpa [#allocation3], 1 }
 0x79d   :  { %985 = vsyncpa [#allocation6], 1 }
 0x79e   :  { %986 = vsyncpa [#allocation9], 1 }
 0x79f   :  { %987 = vsyncpa [#allocation12], 1 }
 0x7a0   :  { %988 = vsyncpa [#allocation4], 1 }

</bundles_post_ra>
